<compile_context>
chip_gen: v7x
topology: tpu7x:2x2x1
jax: 0.10.0
libtpu: 0.0.40
codegen_flags: <defaults>
</compile_context>

<pallas_src>
import jax
import jax.numpy as jnp
from jax.experimental import pallas as pl
from jax.experimental.pallas import tpu as pltpu

_LANE = 128


def _round_up(x: int, m: int) -> int:
    return ((x + m - 1) // m) * m


def _sublane_multiple(dtype) -> int:
    """Sublane granularity for the row tile (packed dtypes pack along sublanes)."""
    itemsize = jnp.dtype(dtype).itemsize
    return {4: 8, 2: 16, 1: 32}.get(itemsize, 8)


def _vmem_capacity_bytes() -> int:
    try:
        return int(pltpu.get_tpu_info().vmem_capacity_bytes)
    except Exception:
        return 64 * 1024 * 1024  # conservative (v7x per-core VMEM)


# ----------------------------------------------------------------------------
# Fallback path: load every input tile, build the row in registers, store once.
# ----------------------------------------------------------------------------
def _concat_kernel(*refs):
    in_refs, o_ref = refs[:-1], refs[-1]
    if len(in_refs) == 1:
        o_ref[...] = in_refs[0][...]
    else:
        o_ref[...] = jnp.concatenate([r[...] for r in in_refs], axis=-1)


# ----------------------------------------------------------------------------
# Fast path: per-input DMA from HBM straight into the output block's column
# slice. No input blocks in VMEM, no vector ops.
# ----------------------------------------------------------------------------
def _make_dma_concat_kernel(last_dims, offsets, tile_rows, remainder):
    n_in = len(last_dims)

    def kernel(*refs):
        in_refs = refs[:n_in]
        o_ref = refs[n_in]
        sems = refs[n_in + 1]
        step = pl.program_id(0)
        row0 = step * tile_rows

        def issue_and_wait(n_rows):
            copies = [
                pltpu.make_async_copy(
                    src.at[pl.ds(row0, n_rows), :],
                    o_ref.at[pl.ds(0, n_rows), pl.ds(off, d)],
                    sems.at[idx],
                )
                for idx, (src, off, d) in enumerate(zip(in_refs, offsets, last_dims))
            ]
            for cp in copies:
                cp.start()
            for cp in copies:
                cp.wait()

        if remainder == 0:
            issue_and_wait(tile_rows)
        else:
            last = pl.num_programs(0) - 1

            @pl.when(step != last)
            def _():
                issue_and_wait(tile_rows)

            @pl.when(step == last)
            def _():
                issue_and_wait(remainder)

    return kernel


def remote_concat(tensors, *, tile_rows=None, vmem_budget_bytes=None):
    """Concatenate a list of arrays along the last dimension with a Pallas kernel.

    Matches torch.cat(dim=-1): all arrays must share leading dims and dtype.
    `tile_rows` optionally overrides the row-tile size (mainly for testing).
    """
    if not tensors:
        raise ValueError("remote_concat requires at least one tensor")

    lead = tensors[0].shape[:-1]
    dtype = tensors[0].dtype
    for t in tensors:
        if t.shape[:-1] != lead:
            raise ValueError("leading dims must match for cat(dim=-1)")
        if t.dtype != dtype:
            raise ValueError("dtypes must match for cat(dim=-1)")

    out_last = int(sum(t.shape[-1] for t in tensors))
    # Zero-width inputs contribute nothing (same as torch.cat) -- drop them.
    parts = [t for t in tensors if t.shape[-1] > 0]

    rows = 1
    for d in lead:
        rows *= int(d)

    if not parts or out_last == 0 or rows == 0:
        return jnp.zeros(lead + (out_last,), dtype)

    last_dims = [int(t.shape[-1]) for t in parts]
    # Collapsing leading dims is a free (layout-preserving) reshape.
    flat_inputs = [t.reshape(rows, d) for t, d in zip(parts, last_dims)]

    offsets = []
    off = 0
    for d in last_dims:
        offsets.append(off)
        off += d

    itemsize = jnp.dtype(dtype).itemsize
    sub = _sublane_multiple(dtype)

    # DMA-placement path only when every column offset/width is 128-lane aligned
    # and every copied row count is sublane-aligned (fully tile-aligned DMAs).
    use_dma = all(d % _LANE == 0 for d in last_dims) and rows % sub == 0

    # ---- row-tile sizing: lane/sublane-padded footprint vs VMEM budget ------
    padded_out = _round_up(out_last, _LANE)
    padded_in = sum(_round_up(d, _LANE) for d in last_dims)

    vmem_cap = _vmem_capacity_bytes()
    if vmem_budget_bytes is None:
        # ~48 MiB on 128-MiB parts (v5e/v6e), ~24 MiB on 64-MiB parts (v7x).
        vmem_budget_bytes = (vmem_cap * 3) // 8

    if use_dma:
        # Only the double-buffered output block lives in VMEM.
        bytes_per_row = 2 * padded_out * itemsize
    else:
        # Double-buffered inputs AND output, each lane-padded to 128.
        bytes_per_row = 2 * (padded_in + padded_out) * itemsize

    if tile_rows is None:
        tile_rows = max(sub, vmem_budget_bytes // max(1, bytes_per_row))
    tile_rows = int(tile_rows)
    if tile_rows >= rows:
        tile_rows = rows  # full extent is always a legal block shape
    else:
        tile_rows = max(sub, (tile_rows // sub) * sub)

    grid = (pl.cdiv(rows, tile_rows),)
    remainder = rows % tile_rows  # 0 when the grid divides evenly

    footprint = bytes_per_row * _round_up(tile_rows, sub)
    vmem_limit = int(min(max(footprint + (4 << 20), 16 << 20), (vmem_cap * 7) // 8))

    compiler_params = pltpu.CompilerParams(
        dimension_semantics=("parallel",),
        vmem_limit_bytes=vmem_limit,
    )
    cost = pl.CostEstimate(
        flops=0,
        transcendentals=0,
        bytes_accessed=2 * rows * out_last * itemsize,
    )

    out_shape = jax.ShapeDtypeStruct((rows, out_last), dtype)
    out_spec = pl.BlockSpec((tile_rows, out_last), lambda i: (i, 0))

    if use_dma:
        kernel = _make_dma_concat_kernel(last_dims, offsets, tile_rows, remainder)
        flat_out = pl.pallas_call(
            kernel,
            out_shape=out_shape,
            grid=grid,
            in_specs=[pl.BlockSpec(memory_space=pl.ANY) for _ in parts],
            out_specs=out_spec,
            scratch_shapes=[pltpu.SemaphoreType.DMA((len(parts),))],
            compiler_params=compiler_params,
            cost_estimate=cost,
        )(*flat_inputs)
    else:
        in_specs = [pl.BlockSpec((tile_rows, d), lambda i: (i, 0)) for d in last_dims]
        flat_out = pl.pallas_call(
            _concat_kernel,
            out_shape=out_shape,
            grid=grid,
            in_specs=in_specs,
            out_specs=out_spec,
            compiler_params=compiler_params,
            cost_estimate=cost,
        )(*flat_inputs)

    return flat_out.reshape(lead + (out_last,))


if __name__ == "__main__":
    key = jax.random.PRNGKey(0)
    k1, k2, k3, k4, k5 = jax.random.split(key, 5)

    B, S = 2, 8
    # Three "remote" tensors with different (non-aligned) feature widths.
    x1 = jax.random.normal(k1, (B, S, 32), dtype=jnp.float32)
    x2 = jax.random.normal(k2, (B, S, 16), dtype=jnp.float32)
    x3 = jax.random.normal(k3, (B, S, 48), dtype=jnp.float32)

    ref = jnp.concatenate([x1, x2, x3], axis=-1)

    # Fallback (vreg concat) path, single block.
    out = jax.block_until_ready(remote_concat([x1, x2, x3]))
    assert out.shape == (B, S, 96), out.shape
    assert jnp.allclose(out, ref), "mismatch vs jnp.concatenate reference"

    # Fallback path, multi-step grid (tile_rows=8 -> 2 steps over 16 rows).
    out2 = jax.block_until_ready(remote_concat([x1, x2, x3], tile_rows=8))
    assert jnp.allclose(out2, ref), "mismatch on tiled-grid path"

    # Single-input degenerate case (torch.cat of one tensor).
    out3 = jax.block_until_ready(remote_concat([x2]))
    assert jnp.allclose(out3, x2), "mismatch on single-input path"

    # 128-lane-aligned widths -> DMA-placement path (inputs stay in HBM,
    # per-input async_copy into column slices of the VMEM output block).
    y1 = jax.random.normal(k4, (2, 12, 128), dtype=jnp.float32)
    y2 = jax.random.normal(k5, (2, 12, 256), dtype=jnp.float32)
    yref = jnp.concatenate([y1, y2], axis=-1)

    # Single block (24 rows in one grid step).
    yo = jax.block_until_ready(remote_concat([y1, y2]))
    assert yo.shape == (2, 12, 384), yo.shape
    assert jnp.allclose(yo, yref), "mismatch on DMA-placement path"

    # Multi-step grid, evenly divisible (24 rows / 8-row tiles -> 3 steps).
    yo2 = jax.block_until_ready(remote_concat([y1, y2], tile_rows=8))
    assert jnp.allclose(yo2, yref), "mismatch on DMA-placement tiled path"

    # Multi-step grid with a partial (sublane-aligned) final tile:
    # 24 rows / 16-row tiles -> last step copies 8 rows.
    yo3 = jax.block_until_ready(remote_concat([y1, y2], tile_rows=16))
    assert jnp.allclose(yo3, yref), "mismatch on DMA-placement remainder path"

    print("KERNEL_OK")
</pallas_src>

<mosaic_0001>
module attributes {stable_mosaic.version = 11 : i64} {
  func.func @_concat_kernel(%arg0: i32, %arg1: memref<16x32xf32, #tpu.memory_space<vmem>>, %arg2: memref<16x16xf32, #tpu.memory_space<vmem>>, %arg3: memref<16x48xf32, #tpu.memory_space<vmem>>, %arg4: memref<16x96xf32, #tpu.memory_space<vmem>>) attributes {dimension_semantics = [#tpu.dimension_semantics<parallel>], iteration_bounds = array<i64: 1>, scalar_prefetch = 0 : i64, scratch_operands = 0 : i64, tpu.core_type = #tpu.core_type<tc>, window_params = [{transform_indices = @transform_0, window_bounds = array<i64: 16, 32>}, {transform_indices = @transform_1, window_bounds = array<i64: 16, 16>}, {transform_indices = @transform_2, window_bounds = array<i64: 16, 48>}, {transform_indices = @transform_3, window_bounds = array<i64: 16, 96>}]} {
    %c0 = arith.constant 0 : index
    %c0_0 = arith.constant 0 : index
    %0 = vector.load %arg1[%c0, %c0_0] : memref<16x32xf32, #tpu.memory_space<vmem>>, vector<16x32xf32>
    %c0_1 = arith.constant 0 : index
    %c0_2 = arith.constant 0 : index
    %1 = vector.load %arg2[%c0_1, %c0_2] : memref<16x16xf32, #tpu.memory_space<vmem>>, vector<16x16xf32>
    %c0_3 = arith.constant 0 : index
    %c0_4 = arith.constant 0 : index
    %2 = vector.load %arg3[%c0_3, %c0_4] : memref<16x48xf32, #tpu.memory_space<vmem>>, vector<16x48xf32>
    %3 = tpu.concatenate %0, %1, %2 in 1 : vector<16x32xf32>, vector<16x16xf32>, vector<16x48xf32> -> vector<16x96xf32>
    %c0_5 = arith.constant 0 : index
    %c0_6 = arith.constant 0 : index
    %4 = vector.load %arg4[%c0_5, %c0_6] : memref<16x96xf32, #tpu.memory_space<vmem>>, vector<16x96xf32>
    tpu.vector_store %arg4[%c0_5, %c0_6], %3 {strides = array<i32>} : memref<16x96xf32, #tpu.memory_space<vmem>>, vector<16x96xf32>,
    return
  }
  func.func @transform_0(%arg0: i32) -> (i32, i32) {
    %c0_i32 = arith.constant 0 : i32
    %c0_i32_0 = arith.constant 0 : i32
    return %arg0, %c0_i32 : i32, i32
  }
  func.func @transform_1(%arg0: i32) -> (i32, i32) {
    %c0_i32 = arith.constant 0 : i32
    %c0_i32_0 = arith.constant 0 : i32
    return %arg0, %c0_i32 : i32, i32
  }
  func.func @transform_2(%arg0: i32) -> (i32, i32) {
    %c0_i32 = arith.constant 0 : i32
    %c0_i32_0 = arith.constant 0 : i32
    return %arg0, %c0_i32 : i32, i32
  }
  func.func @transform_3(%arg0: i32) -> (i32, i32) {
    %c0_i32 = arith.constant 0 : i32
    %c0_i32_0 = arith.constant 0 : i32
    return %arg0, %c0_i32 : i32, i32
  }
}

</mosaic_0001>

<bundles_post_ra>
// kernel: tpu_custom_call.1
= control target key start
LH: loop header
LB: loop body
LE: loop exit
PB: predicated region body
PF: predicated region fallthrough
CT: control target
= control target key end

     0   :  { %8 = vsyncpa [#allocation3], 0  ;;  %s302_s0 = inlined_call_operand.hbm [shape: f32[16,32], index: 0, kind: input, shape index: {}]   ;;  %s303_s1 = inlined_call_operand.hbm [shape: f32[16,16], index: 1, kind: input, shape index: {}]   ;;  %s304_s2 = inlined_call_operand.hbm [shape: f32[16,48], index: 2, kind: input, shape index: {}]   ;;  %s305_s3 = inlined_call_operand.hbm [shape: f32[16,96], index: 3, kind: output, shape index: {}]  }
   0x1   :  { %9 = vsyncpa [#allocation6], 0 }
   0x2   :  { %10 = vsyncpa [#allocation4], 0  ;;  %s207_s12 = smov [#allocation5]   ;;  %s208_s14 = smov [#allocation2]  }
   0x3   :  { %s28_s13 = sshll.u32 %s207_s12, 4  ;;  %s16_s15 = sshll.u32 %s208_s14, 4  ;;  %s29_s13 = int_to_ptr.vmem [resolvable:$true] %s28_s13  ;;  %s235_s15 = int_to_ptr.vmem [resolvable:$true] %s16_s15 }
   0x4   :  { %s113_s18 = scalar_lea.hbm %s303_s1, 256 }
   0x5   :  { %p114_p0 = scmp.ne.s32.totalorder %s303_s1, %s113_s18  ;;  %p117_p1 = scmp.lt.u32.totalorder %s113_s18, %s303_s1 }
   0x7   :  { %p119_p2 = pnand %p117_p1, %p114_p0 }
   0x9   :  { %122 = shalt.err (!%p119_p2)
}
   0xa   :  { %s123_s23 = scalar_lea.vmem %s29_s13, 256  ;;  %p128_p4 = scmp.lt.s32.totalorder %s29_s13, %s29_s13 }
   0xb   :  { %p124_p3 = scmp.ne.s32.totalorder %s29_s13, %s123_s23  ;;  %p129_p5 = scmp.lt.s32.totalorder %s123_s23, %s123_s23 }
   0xd   :  { %p130_p6 = por %p129_p5, %p128_p4 }
   0xf   :  { %p131_p7 = pnand %p130_p6, %p124_p3 }
  0x11   :  { %134 = shalt.err (!%p131_p7)
}
  0x12   :  { %s209_s24 = smov 128   ;;  %s210_s25 = smov 8  }
  0x13   :  { %34 = dma.hbm_to_vmem [thread:$0]  %s303_s1, 256, %s29_s13, [#allocation6], %s209_s24, %s209_s24, %s210_s25  }
  0x14   :  { %s135_s30 = scalar_lea.hbm %s302_s0, 256 }
  0x15   :  { %p136_p8 = scmp.ne.s32.totalorder %s302_s0, %s135_s30  ;;  %p139_p9 = scmp.lt.u32.totalorder %s135_s30, %s302_s0 }
  0x17   :  { %p141_p10 = pnand %p139_p9, %p136_p8 }
  0x19   :  { %144 = shalt.err (!%p141_p10)
}
  0x1a   :  { %s145_s8 = scalar_lea.vmem %s235_s15, 256  ;;  %p150_p12 = scmp.lt.s32.totalorder %s235_s15, %s235_s15 }
  0x1b   :  { %p146_p11 = scmp.ne.s32.totalorder %s235_s15, %s145_s8  ;;  %p151_p13 = scmp.lt.s32.totalorder %s145_s8, %s145_s8 }
  0x1d   :  { %p152_p0 = por %p151_p13, %p150_p12 }
  0x1f   :  { %p153_p1 = pnand %p152_p0, %p146_p11 }
  0x21   :  { %156 = shalt.err (!%p153_p1)
}
  0x22   :  { %22 = dma.hbm_to_vmem [thread:$0]  %s302_s0, 256, %s235_s15, [#allocation3], %s209_s24, %s209_s24, %s210_s25  }
  0x23   :  { %s211_s10 = smov [#allocation7]   ;;  %s157_s14 = scalar_lea.hbm %s304_s2, 256 }
  0x24   :  { %s40_s11 = sshll.u32 %s211_s10, 4  ;;  %p158_p2 = scmp.ne.s32.totalorder %s304_s2, %s157_s14  ;;  %s41_s11 = int_to_ptr.vmem [resolvable:$true] %s40_s11 }
  0x25   :  { %p161_p3 = scmp.lt.u32.totalorder %s157_s14, %s304_s2 }
  0x27   :  { %p163_p4 = pnand %p161_p3, %p158_p2 }
  0x29   :  { %166 = shalt.err (!%p163_p4)
}
  0x2a   :  { %s167_s20 = scalar_lea.vmem %s41_s11, 256  ;;  %p172_p6 = scmp.lt.s32.totalorder %s41_s11, %s41_s11 }
  0x2b   :  { %p168_p5 = scmp.ne.s32.totalorder %s41_s11, %s167_s20  ;;  %p173_p7 = scmp.lt.s32.totalorder %s167_s20, %s167_s20 }
  0x2d   :  { %p174_p8 = por %p173_p7, %p172_p6 }
  0x2f   :  { %p175_p9 = pnand %p174_p8, %p168_p5 }
  0x31   :  { %178 = shalt.err (!%p175_p9)
}
  0x32   :  { %46 = dma.hbm_to_vmem [thread:$0]  %s304_s2, 256, %s41_s11, [#allocation6], %s209_s24, %s209_s24, %s210_s25  }
  0x33   :  { %201 = dma.done.wait [#allocation3], 256  }
  0x34   :  { %202 = vsyncadd [#allocation3], 4294967040 }
  0x35   :  { %203 = dma.done.wait [#allocation6], 512  }
  0x36   :  { %204 = vsyncadd [#allocation6], 4294966784  ;;  %v58_v0 = vld [vmem:[#allocation5] sm:$0xff]  ;;  %v60_v1 = vld [vmem:[#allocation7] sm:$0xff]  ;;  %s212_s21 = smov 32   ;;  %s213_s22 = smov 48  }
  0x37   :  { %64 = vrot.lane.b32.xlu0 %v58_v0, %s212_s21  ;;  %72 = vrot.lane.b32.xlu1 %v60_v1, %s213_s22  ;;  %v59_v2 = vld [vmem:[#allocation5 + $0x8] sm:$0xff]  ;;  %v61_v3 = vld [vmem:[#allocation7 + $0x8] sm:$0xff]  ;;  %vm78_vm0 = vcmask 261120   ;;  %v56_v4 = vld [vmem:[#allocation2] sm:$0xff]  ;;  %vm81_vm1 = vcmask 392192   ;;  %vm84_vm2 = vcmask 785408  }
  0x38   :  { %v57_v9 = vld [vmem:[#allocation2 + $0x8] sm:$0xff]  ;;  %s214_s2 = smov [#allocation8]  }
  0x39   :  { %s92_s23 = sshll.u32 %s214_s2, 4  ;;  %s93_s23 = int_to_ptr.vmem [resolvable:$true] %s92_s23 }
  0x3a   :  { %s179_s26 = scalar_lea.vmem %s93_s23, 256  ;;  %p184_p11 = scmp.lt.s32.totalorder %s93_s23, %s93_s23 }
  0x3b   :  { %66 = vrot.lane.b32.xlu0 %v59_v2, %s212_s21  ;;  %74 = vrot.lane.b32.xlu1 %v61_v3, %s213_s22  ;;  %p180_p10 = scmp.ne.s32.totalorder %s93_s23, %s179_s26  ;;  %p185_p12 = scmp.lt.s32.totalorder %s179_s26, %s179_s26 }
  0x3d   :  { %p186_p13 = por %p185_p12, %p184_p11 }
  0x3f   :  { %p187_p0 = pnand %p186_p13, %p180_p10 }
  0xa9   :  { %v65_v5 = vpop.permute.xlu0 %64  ;;  %v73_v6 = vpop.permute.xlu1 %72 }
  0xaa   :  { %v79_v7 = vsel %vm78_vm0, %v56_v4, %v65_v5 }
  0xab   :  { %v82_v8 = vsel %vm81_vm1, %v79_v7, %v73_v6 }
  0xac   :  { %85 = vst.msk [vmem:[#allocation8] sm:$0xff] %vm84_vm2, %v82_v8 }
  0xad   :  { %v67_v10 = vpop.permute.xlu0 %66  ;;  %v75_v11 = vpop.permute.xlu1 %74 }
  0xae   :  { %v80_v12 = vsel %vm78_vm0, %v57_v9, %v67_v10 }
  0xaf   :  { %v83_v13 = vsel %vm81_vm1, %v80_v12, %v75_v11 }
  0xb0   :  { %86 = vst.msk [vmem:[#allocation8 + $0x8] sm:$0xff] %vm84_vm2, %v83_v13 }
  0xb1   :  { %190 = shalt.err (!%p187_p0)
}
  0xb2   :  { %s191_s29 = scalar_lea.hbm %s305_s3, 256 }
  0xb3   :  { %p192_p1 = scmp.ne.s32.totalorder %s305_s3, %s191_s29  ;;  %p195_p2 = scmp.lt.u32.totalorder %s191_s29, %s305_s3 }
  0xb5   :  { %p197_p3 = pnand %p195_p2, %p192_p1 }
  0xb7   :  { %200 = shalt.err (!%p197_p3)
}
  0xb8   :  { %98 = dma.vmem_to_hbm [thread:$0]  %s93_s23, 256, %s305_s3, [#allocation4], %s209_s24, %s209_s24, %s210_s25  }
  0xb9   :  { %205 = dma.done.wait [#allocation4], 256  }
  0xba   :  { %206 = vsyncadd [#allocation4], 4294967040 }
  0xbb   :  { %102 = vsyncpa [#allocation3], 1 }
  0xbc   :  { %103 = vsyncpa [#allocation6], 1 }
  0xbd   :  { %104 = vsyncpa [#allocation4], 1 }

</bundles_post_ra>
